<compile_context>
chip_gen: v5e
topology: v5e:2x2
jax: 0.10.0
libtpu: 0.0.40
codegen_flags: <defaults>
</compile_context>

<pallas_src>
import functools

import numpy as np
import jax
import jax.numpy as jnp
from jax import lax
from jax.experimental import pallas as pl
from jax.experimental.pallas import tpu as pltpu


LANE = 128    # batch lanes processed per grid step (lane-dense output block)
CHUNK = 128   # table entries processed per MXU step


# ----------------------------------------------------------------------------
# Parameter setup (host-side numpy "__init__", mirrors diffusion_utils.cosine_beta_schedule)
# ----------------------------------------------------------------------------
def cosine_beta_schedule(timesteps, s=0.008, raise_to_power=1.0):
    steps = timesteps + 2
    x = np.linspace(0, steps, steps)
    alphas_cumprod = np.cos(((x / steps) + s) / (1 + s) * np.pi * 0.5) ** 2
    alphas_cumprod = alphas_cumprod / alphas_cumprod[0]
    betas = 1.0 - (alphas_cumprod[1:] / alphas_cumprod[:-1])
    betas = np.clip(betas, a_min=0.0, a_max=0.999)
    alphas = 1.0 - betas
    alphas_cumprod = np.cumprod(alphas, axis=0)
    if raise_to_power != 1.0:
        alphas_cumprod = np.power(alphas_cumprod, raise_to_power)
    return alphas_cumprod  # length timesteps + 1


def make_gamma_table(timesteps):
    alphas2 = cosine_beta_schedule(timesteps)
    sigmas2 = 1.0 - alphas2
    gamma = -(np.log(alphas2) - np.log(sigmas2))
    return jnp.asarray(gamma.astype(np.float32))          # (timesteps + 1,)


def pack_gamma_operand(gamma, chunk=CHUNK):
    """Exact bf16 3-way split of the f32 gamma table, packed as the (8, T_pad)
    bf16 MXU LHS operand (rows 0..2 = hi/mid/lo, rows 3..7 = 0). Built once at
    "module init" time, like the frozen PyTorch Parameter."""
    g = jnp.asarray(gamma, jnp.float32).reshape(-1)
    t1 = g.shape[0]
    hi = g.astype(jnp.bfloat16)
    r1 = g - hi.astype(jnp.float32)
    mid = r1.astype(jnp.bfloat16)
    r2 = r1 - mid.astype(jnp.float32)
    lo = r2.astype(jnp.bfloat16)                           # hi + mid + lo == g (to ~1 ulp)
    zero = jnp.zeros_like(hi)
    packed = jnp.stack([hi, mid, lo, zero, zero, zero, zero, zero], axis=0)   # (8, T1)
    t_pad = ((t1 + chunk - 1) // chunk) * chunk
    if t_pad != t1:
        packed = jnp.pad(packed, ((0, 0), (0, t_pad - t1)))
    return packed                                          # (8, T_pad) bf16


# ----------------------------------------------------------------------------
# Pallas kernel: t_int = clip(round(t*T), 0, T); out[b] = gamma[t_int[b]]
# ----------------------------------------------------------------------------
def _noise_schedule_kernel(t_ref, gsplit_ref, o_ref, *, timesteps, chunk):
    # t_ref:      (1, B_BLK) f32   -- batch on the lane axis (lane-dense)
    # gsplit_ref: (8, T_pad) bf16  -- rows 0..2 = exact bf16 hi/mid/lo split of gamma
    # o_ref:      (1, B_BLK) f32   -- lane-dense output block
    t = t_ref[...]
    t_int = jnp.clip(jnp.round(t * float(timesteps)).astype(jnp.int32),
                     0, timesteps)                                    # (1, B_BLK) int32

    b_blk = t.shape[1]
    t_pad = gsplit_ref.shape[1]
    n_chunks = t_pad // chunk

    # Table-position iota for one chunk; hoisted (loop-invariant).
    k = lax.broadcasted_iota(jnp.int32, (chunk, b_blk), 0)            # (CHUNK, B_BLK)

    # Chunked one-hot x table matmul on the MXU:
    #   acc[r, b] = sum_k gamma_split[r, k] * (k == t_int[b])
    # Exactly one column of `onehot` is 1.0 per batch lane, so each MXU product is
    # exact (bf16 value * 1.0) and the accumulation is exact.
    acc = jnp.zeros((8, b_blk), jnp.float32)
    for c in range(n_chunks):                                         # static, fully unrolled
        lhs = gsplit_ref[:, pl.ds(c * chunk, chunk)]                  # (8, CHUNK) bf16
        onehot = (k == (t_int - c * chunk)).astype(jnp.bfloat16)      # (CHUNK, B_BLK) bf16
        acc = acc + jnp.dot(lhs, onehot, preferred_element_type=jnp.float32)  # (8, B_BLK)

    # Rows 0..2 hold the hi/mid/lo partial gathers (rows 3..7 are zero); their f32
    # sum reconstructs gamma[t_int] to ~1 ulp. Lane-dense (1, B_BLK) store.
    o_ref[...] = jnp.sum(acc, axis=0, keepdims=True)


def predefined_noise_schedule_forward(t, gamma_packed, timesteps, *, b_blk=LANE, chunk=CHUNK):
    """t: any shape (typically (B, 1)) float in [0, 1]; gamma_packed: (8, T_pad) bf16
    from pack_gamma_operand. Returns gamma[round(t*T)] with t's shape, float32."""
    assert gamma_packed.ndim == 2 and gamma_packed.shape[0] == 8
    assert gamma_packed.shape[1] % chunk == 0

    orig_shape = t.shape
    b = int(t.size)
    t_row = jnp.reshape(t, (1, b)).astype(jnp.float32)      # batch onto the lane axis
    b_pad = ((b + b_blk - 1) // b_blk) * b_blk
    if b_pad != b:
        t_row = jnp.pad(t_row, ((0, 0), (0, b_pad - b)))    # pad value 0.0 -> index 0 (harmless)
    t_pad = gamma_packed.shape[1]

    kernel = functools.partial(_noise_schedule_kernel, timesteps=timesteps, chunk=chunk)
    out = pl.pallas_call(
        kernel,
        out_shape=jax.ShapeDtypeStruct((1, b_pad), jnp.float32),
        grid=(b_pad // b_blk,),
        in_specs=[
            pl.BlockSpec((1, b_blk), lambda i: (0, i)),      # per-block batch lanes
            pl.BlockSpec((8, t_pad), lambda i: (0, 0)),      # table resident; constant index -> no re-fetch
        ],
        out_specs=pl.BlockSpec((1, b_blk), lambda i: (0, i)),
        compiler_params=pltpu.CompilerParams(dimension_semantics=("parallel",)),
    )(t_row, gamma_packed)

    return out[0, :b].reshape(orig_shape)                    # same shape as t (PyTorch gather)


# ----------------------------------------------------------------------------
# Reference (plain JAX) for correctness check
# ----------------------------------------------------------------------------
def reference_forward(t, gamma, timesteps):
    t_int = jnp.round(t * timesteps).astype(jnp.int32)
    return gamma[t_int]


if __name__ == "__main__":
    # Config 1: small table, batch 8 (single grid block, single table chunk).
    timesteps = 16
    gamma = make_gamma_table(timesteps)                      # (17,) f32 "parameter"
    gamma_packed = pack_gamma_operand(gamma)                 # (8, 128) bf16, built once at init

    key = jax.random.PRNGKey(0)
    k1, k2 = jax.random.split(key)
    B = 8
    t = jax.random.uniform(k1, (B, 1), dtype=jnp.float32)
    t = t.at[0, 0].set(0.0)                                  # first table entry
    t = t.at[1, 0].set(1.0)                                  # last table entry / clamp boundary

    out = jax.block_until_ready(predefined_noise_schedule_forward(t, gamma_packed, timesteps))
    ref = reference_forward(t, gamma, timesteps)
    assert out.shape == (B, 1) and out.dtype == jnp.float32
    np.testing.assert_allclose(np.asarray(out), np.asarray(ref), rtol=1e-6, atol=1e-6)

    # Config 2: larger table (exercises the chunked MXU loop: 3 chunks) and a batch
    # that is not a multiple of 128 (exercises lane padding + slice-back).
    timesteps2 = 300
    gamma2 = make_gamma_table(timesteps2)
    gamma2_packed = pack_gamma_operand(gamma2)               # (8, 384) bf16
    t2 = jax.random.uniform(k2, (5, 1), dtype=jnp.float32)
    out2 = jax.block_until_ready(predefined_noise_schedule_forward(t2, gamma2_packed, timesteps2))
    ref2 = reference_forward(t2, gamma2, timesteps2)
    np.testing.assert_allclose(np.asarray(out2), np.asarray(ref2), rtol=1e-6, atol=1e-6)

    print("KERNEL_OK")
</pallas_src>

<mosaic_0001>
module attributes {stable_mosaic.version = 11 : i64} {
  func.func @_noise_schedule_kernel(%arg0: i32, %arg1: memref<1x128xf32, #tpu.memory_space<vmem>>, %arg2: memref<8x128xbf16, #tpu.memory_space<vmem>>, %arg3: memref<1x128xf32, #tpu.memory_space<vmem>>) attributes {dimension_semantics = [#tpu.dimension_semantics<parallel>], iteration_bounds = array<i64: 1>, scalar_prefetch = 0 : i64, scratch_operands = 0 : i64, tpu.core_type = #tpu.core_type<tc>, window_params = [{transform_indices = @transform_0, window_bounds = array<i64: 1, 128>}, {pipeline_mode = #tpu.pipeline_mode<synchronous>, transform_indices = @transform_1, window_bounds = array<i64: 8, 128>}, {transform_indices = @transform_2, window_bounds = array<i64: 1, 128>}]} {
    %c0 = arith.constant 0 : index
    %c0_0 = arith.constant 0 : index
    %0 = vector.load %arg1[%c0, %c0_0] : memref<1x128xf32, #tpu.memory_space<vmem>>, vector<1x128xf32>
    %cst = arith.constant 1.600000e+01 : f32
    %1 = vector.broadcast %cst : f32 to vector<1x128xf32>
    %2 = arith.mulf %0, %1 : vector<1x128xf32>
    %3 = math.roundeven %2 : vector<1x128xf32>
    %4 = arith.fptosi %3 : vector<1x128xf32> to vector<1x128xi32>
    %c0_i32 = arith.constant 0 : i32
    %c16_i32 = arith.constant 16 : i32
    %5 = vector.broadcast %c0_i32 : i32 to vector<1x128xi32>
    %6 = arith.maxsi %5, %4 : vector<1x128xi32>
    %7 = vector.broadcast %c16_i32 : i32 to vector<1x128xi32>
    %8 = arith.minsi %7, %6 : vector<1x128xi32>
    %9 = tpu.iota {dimensions = array<i32: 0>} : vector<128x128xi32>
    %cst_1 = arith.constant 0.000000e+00 : f32
    %10 = vector.broadcast %cst_1 : f32 to vector<8x128xf32>
    %c0_2 = arith.constant 0 : index
    %c0_3 = arith.constant 0 : index
    %11 = vector.load %arg2[%c0_2, %c0_3] : memref<8x128xbf16, #tpu.memory_space<vmem>>, vector<8x128xbf16>
    %c0_i32_4 = arith.constant 0 : i32
    %12 = vector.broadcast %c0_i32_4 : i32 to vector<1x128xi32>
    %13 = arith.subi %8, %12 : vector<1x128xi32>
    %14 = vector.broadcast %13 : vector<1x128xi32> to vector<128x128xi32>
    %15 = arith.cmpi eq, %9, %14 : vector<128x128xi32>
    %16 = arith.extui %15 : vector<128x128xi1> to vector<128x128xi32>
    %17 = arith.sitofp %16 : vector<128x128xi32> to vector<128x128xf32>
    %18 = arith.truncf %17 : vector<128x128xf32> to vector<128x128xbf16>
    %cst_5 = arith.constant dense<0.000000e+00> : vector<8x128xf32>
    %19 = tpu.matmul %11, %18, %cst_5 {dimension_numbers = #tpu.dot_dimension_numbers<[1], [0], [0], [1], [0, 0, 1, 1], [], []>} : vector<8x128xbf16>, vector<128x128xbf16>, vector<8x128xf32> -> vector<8x128xf32>
    %20 = arith.addf %10, %19 : vector<8x128xf32>
    %cst_6 = arith.constant dense<0.000000e+00> : vector<128xf32>
    %21 = vector.multi_reduction <add>, %20, %cst_6 [0] : vector<8x128xf32> to vector<128xf32>
    %22 = vector.shape_cast %21 : vector<128xf32> to vector<1x128xf32>
    %c0_7 = arith.constant 0 : index
    %c0_8 = arith.constant 0 : index
    %23 = vector.load %arg3[%c0_7, %c0_8] : memref<1x128xf32, #tpu.memory_space<vmem>>, vector<1x128xf32>
    tpu.vector_store %arg3[%c0_7, %c0_8], %22 {strides = array<i32>} : memref<1x128xf32, #tpu.memory_space<vmem>>, vector<1x128xf32>,
    return
  }
  func.func @transform_0(%arg0: i32) -> (i32, i32) {
    %c0_i32 = arith.constant 0 : i32
    %c0_i32_0 = arith.constant 0 : i32
    return %c0_i32, %arg0 : i32, i32
  }
  func.func @transform_1(%arg0: i32) -> (i32, i32) {
    %c0_i32 = arith.constant 0 : i32
    %c0_i32_0 = arith.constant 0 : i32
    %c0_i32_1 = arith.constant 0 : i32
    return %c0_i32, %c0_i32_0 : i32, i32
  }
  func.func @transform_2(%arg0: i32) -> (i32, i32) {
    %c0_i32 = arith.constant 0 : i32
    %c0_i32_0 = arith.constant 0 : i32
    return %c0_i32, %arg0 : i32, i32
  }
}

</mosaic_0001>

<bundles_post_ra>
// kernel: tpu_custom_call.1
= control target key start
LH: loop header
LB: loop body
LE: loop exit
PB: predicated region body
PF: predicated region fallthrough
CT: control target
= control target key end

     0   :  { %7 = vsyncpa [#allocation3], 0  ;;  %s305_s0 = inlined_call_operand.hbm [shape: f32[1,128], index: 0, kind: input, shape index: {}]   ;;  %s306_s1 = inlined_call_operand.hbm [shape: bf16[8,128], index: 1, kind: input, shape index: {}]   ;;  %s307_s2 = inlined_call_operand.hbm [shape: f32[1,128], index: 2, kind: output, shape index: {}]  }
   0x1   :  { %8 = vsyncpa [#allocation6], 0 }
   0x2   :  { %9 = vsyncpa [#allocation4], 0  ;;  %s15_s11 = sshll.u32 %s305_s0, 4  ;;  %s277_s12 = smov [#allocation2]   ;;  %s16_s11 = int_to_ptr.hbm [resolvable:$true] %s15_s11 }
   0x3   :  { %s17_s13 = sshll.u32 %s277_s12, 4  ;;  %s26_s16 = sshll.u32 %s306_s1, 4  ;;  %s18_s13 = int_to_ptr.vmem [resolvable:$true] %s17_s13  ;;  %s27_s16 = int_to_ptr.hbm [resolvable:$true] %s26_s16 }
   0x4   :  { %20 = dma.hbm_to_vmem [thread:$0]  %s16_s11, 16, %s18_s13, [#allocation3]  }
   0x5   :  { %s278_s17 = smov [#allocation5]  }
   0x6   :  { %s28_s18 = sshll.u32 %s278_s17, 4  ;;  %s29_s18 = int_to_ptr.vmem [resolvable:$true] %s28_s18 }
   0x7   :  { %31 = dma.hbm_to_vmem [thread:$0]  %s27_s16, 64, %s29_s18, [#allocation6]  }
   0x8   :  { %271 = dma.done.wait [#allocation3], 16  }
   0x9   :  { %272 = vsyncadd [#allocation3], 4294967280 }
   0xa   :  { %273 = dma.done.wait [#allocation6], 64  }
   0xb   :  { %274 = vsyncadd [#allocation6], 4294967232  ;;  %v47_v0 = vlaneseq  ;;  %v40_v1 = vld [vmem:[#allocation2] sm:$0x1]  ;;  %v279_v14 = vmov 1.0|1.0  }
   0xc   :  { %v41_v2 = vmul.f32 16.0, %v40_v1  ;;  %v64_v24 = vld [vmem:[#allocation5] sm:$0xf]  ;;  %s280_s0 = smov [#allocation7]   ;;  %s149_s21 = sshll.u32 %s307_s2, 4  ;;  %s150_s21 = int_to_ptr.hbm [resolvable:$true] %s149_s21 }
   0xd   :  { %v48_v3 = vshrl.u32 %v47_v0, 7  ;;  %s147_s1 = sshll.u32 %s280_s0, 4  ;;  %s148_s1 = int_to_ptr.vmem [resolvable:$true] %s147_s1 }
   0xe   :  { %v194_v4 = vcvt.f32.s32 %v41_v2 }
   0xf   :  { %v62_v6 = vadd.s32 112, %v48_v3  ;;  %v63_v7 = vadd.s32 120, %v48_v3  ;;  %v60_v8 = vadd.s32 96, %v48_v3  ;;  %v61_v9 = vadd.s32 104, %v48_v3 }
  0x10   :  { %vm43_vm0 = vcmp.gt.s32.totalorder %v194_v4, 0  ;;  %v58_v12 = vadd.s32 80, %v48_v3  ;;  %v59_v13 = vadd.s32 88, %v48_v3  ;;  %v56_v15 = vadd.s32 64, %v48_v3 }
  0x11   :  { %v44_v5 = vsel %vm43_vm0, %v194_v4, 0  ;;  %v57_v16 = vadd.s32 72, %v48_v3  ;;  %v54_v17 = vadd.s32 48, %v48_v3  ;;  %v55_v18 = vadd.s32 56, %v48_v3 }
  0x12   :  { %vm45_vm1 = vcmp.lt.s32.totalorder %v44_v5, 16  ;;  %v52_v19 = vadd.s32 32, %v48_v3  ;;  %v53_v20 = vadd.s32 40, %v48_v3  ;;  %v50_v21 = vadd.s32 16, %v48_v3 }
  0x13   :  { %v46_v10 = vsel %vm45_vm1, %v44_v5, 16  ;;  %v51_v22 = vadd.s32 24, %v48_v3  ;;  %v49_v23 = vadd.s32 8, %v48_v3 }
  0x14   :  { %v65_v11 = vperm.slane %v46_v10, 0 }
  0x16   :  { %vm80_vm2 = vcmp.eq.s32.totalorder %v62_v6, %v65_v11  ;;  %vm81_vm3 = vcmp.eq.s32.totalorder %v63_v7, %v65_v11  ;;  %vm78_vm4 = vcmp.eq.s32.totalorder %v60_v8, %v65_v11  ;;  %vm79_vm5 = vcmp.eq.s32.totalorder %v61_v9, %v65_v11 }
  0x17   :  { %vm176_vm6 = vmpackc.low %vm81_vm3, %vm80_vm2  ;;  %vm76_vm8 = vcmp.eq.s32.totalorder %v58_v12, %v65_v11  ;;  %vm77_vm9 = vcmp.eq.s32.totalorder %v59_v13, %v65_v11  ;;  %vm74_vm11 = vcmp.eq.s32.totalorder %v56_v15, %v65_v11  ;;  %vm75_vm12 = vcmp.eq.s32.totalorder %v57_v16, %v65_v11 }
  0x18   :  { %177 = vmatpush.bf16.msk.msra.mxu0 %vm176_vm6, %v279_v14  ;;  %vm178_vm7 = vmpackc.low %vm79_vm5, %vm78_vm4  ;;  %vm72_vm14 = vcmp.eq.s32.totalorder %v54_v17, %v65_v11  ;;  %vm73_vm15 = vcmp.eq.s32.totalorder %v55_v18, %v65_v11  ;;  %vm70_vm1 = vcmp.eq.s32.totalorder %v52_v19, %v65_v11  ;;  %vm71_vm2 = vcmp.eq.s32.totalorder %v53_v20, %v65_v11 }
  0x19   :  { %vm180_vm10 = vmpackc.low %vm77_vm9, %vm76_vm8  ;;  %vm68_vm4 = vcmp.eq.s32.totalorder %v50_v21, %v65_v11  ;;  %vm69_vm5 = vcmp.eq.s32.totalorder %v51_v22, %v65_v11  ;;  %vm67_vm8 = vcmp.eq.s32.totalorder %v49_v23, %v65_v11 }
  0x1a   :  { %vm182_vm13 = vmpackc.low %vm75_vm12, %vm74_vm11 }
  0x1b   :  { %vm184_vm0 = vmpackc.low %vm73_vm15, %vm72_vm14 }
  0x1c   :  { %179 = vmatpush.bf16.msk.msra.mxu0 %vm178_vm7, %v279_v14  ;;  %vm186_vm3 = vmpackc.low %vm71_vm2, %vm70_vm1  ;;  %vm66_vm7 = vcmp.eq.s32.totalorder %v48_v3, %v65_v11 }
  0x1d   :  { %vm188_vm6 = vmpackc.low %vm69_vm5, %vm68_vm4 }
  0x1e   :  { %vm190_vm9 = vmpackc.low %vm67_vm8, %vm66_vm7 }
  0x20   :  { %181 = vmatpush.bf16.msk.msra.mxu0 %vm180_vm10, %v279_v14 }
  0x24   :  { %183 = vmatpush.bf16.msk.msra.mxu0 %vm182_vm13, %v279_v14 }
  0x28   :  { %185 = vmatpush.bf16.msk.msra.mxu0 %vm184_vm0, %v279_v14 }
  0x2c   :  { %187 = vmatpush.bf16.msk.msra.mxu0 %vm186_vm3, %v279_v14 }
  0x30   :  { %189 = vmatpush.bf16.msk.msra.mxu0 %vm188_vm6, %v279_v14 }
  0x34   :  { %191 = vmatpush.bf16.msk.msra.mxu0 %vm190_vm9, %v279_v14 }
  0x37   :  { %130 = vmatmul.bf16.vlgmr.msra.gmra.mxu0 %v64_v24 }
  0xb4   :  { %v131_v25 = vpop.f32.mrf.mxu0 }
  0xb5   :  { %v135_v26 = vrot.slane %v131_v25, 4 }
  0xb7   :  { %v136_v27 = vadd.f32 %v135_v26, %v131_v25 }
  0xb9   :  { %v137_v28 = vrot.slane %v136_v27, 2 }
  0xbb   :  { %v138_v29 = vadd.f32 %v137_v28, %v136_v27 }
  0xbc   :  { %v133_v30 = vpop.f32.mrf.mxu0 }
  0xbd   :  { %v139_v31 = vrot.slane %v138_v29, 1 }
  0xbf   :  { %v140_v32 = vadd.f32 %v139_v31, %v138_v29 }
  0xc1   :  { %141 = vst [vmem:[#allocation7] sm:$0x1] %v140_v32 }
  0xc2   :  { %152 = dma.vmem_to_hbm [thread:$0]  %s148_s1, 16, %s150_s21, [#allocation4]  }
  0xc3   :  { %275 = dma.done.wait [#allocation4], 16  }
  0xc4   :  { %276 = vsyncadd [#allocation4], 4294967280 }
  0xc5   :  { %157 = vsyncpa [#allocation3], 1 }
  0xc6   :  { %158 = vsyncpa [#allocation6], 1 }
  0xc7   :  { %159 = vsyncpa [#allocation4], 1 }

</bundles_post_ra>
